<compile_context>
chip_gen: v5e
topology: v5e:2x2
jax: 0.10.0
libtpu: 0.0.40
codegen_flags: <defaults>
</compile_context>

<pallas_src>
import functools

import jax
import jax.numpy as jnp
from jax import lax
from jax.experimental import pallas as pl
from jax.experimental.pallas import tpu as pltpu


def _default_vmem_limit():
    # ~half of physical VMEM: 64 MiB on v5e/v6e (128 MiB phys), 32 MiB on v7x
    # (64 MiB phys).  Falls back to a universally safe 32 MiB.
    try:
        phys = getattr(pltpu.get_tpu_info(), "vmem_capacity_bytes", None)
    except Exception:
        phys = None
    if not phys:
        return 32 * 1024 * 1024
    return int(max(32 * 1024 * 1024, min(96 * 1024 * 1024, phys // 2)))


_VMEM_LIMIT = _default_vmem_limit()


def _choose_tile(total, cap=128):
    """Largest multiple-of-8 divisor of `total` that is <= cap (fallback: total)."""
    cap = min(cap, total)
    for cand in range(cap, 7, -1):
        if total % cand == 0 and cand % 8 == 0:
            return cand
    return total


# ----------------------------------------------------------------------------
# Kernel A: global average pool + 1x1 conv + BN + ReLU + fuse-conv slice
# ----------------------------------------------------------------------------
def _gap_contrib_kernel(x_ref, wg_ref, bg_ref, wf4_ref, o_ref):
    # x_ref: (N, HW, Cin) bf16; wg: (Cin, C) bf16; bg: (1, C) f32; wf4: (C, C) bf16
    n_img = x_ref.shape[0]
    pooled = jnp.concatenate(
        [jnp.mean(x_ref[n].astype(jnp.float32), axis=0, keepdims=True)
         for n in range(n_img)], axis=0)                            # (N, Cin) f32
    g = jnp.dot(pooled.astype(jnp.bfloat16), wg_ref[...],
                preferred_element_type=jnp.float32) + bg_ref[...]
    g = jnp.maximum(g, 0.0)                                         # GAP branch act
    # Contribution of this branch to the final 1280->256 conv: g @ w_fuse[4].
    o_ref[...] = jnp.dot(g.astype(jnp.bfloat16), wf4_ref[...],
                         preferred_element_type=jnp.float32)


def gap_fuse_contrib(x3d_bf16, w_gap, b_gap, w_fuse4):
    N, HW, Cin = x3d_bf16.shape
    Cout = w_gap.shape[-1]
    return pl.pallas_call(
        _gap_contrib_kernel,
        out_shape=jax.ShapeDtypeStruct((N, Cout), jnp.float32),
        grid=(1,),
        in_specs=[
            pl.BlockSpec((N, HW, Cin), lambda i: (0, 0, 0)),
            pl.BlockSpec((Cin, Cout), lambda i: (0, 0)),
            pl.BlockSpec((1, Cout), lambda i: (0, 0)),
            pl.BlockSpec((Cout, Cout), lambda i: (0, 0)),
        ],
        out_specs=pl.BlockSpec((N, Cout), lambda i: (0, 0)),
        compiler_params=pltpu.CompilerParams(
            dimension_semantics=("arbitrary",),
            vmem_limit_bytes=_VMEM_LIMIT),
    )(x3d_bf16, w_gap.astype(jnp.bfloat16), b_gap.astype(jnp.float32),
      w_fuse4.astype(jnp.bfloat16))


# ----------------------------------------------------------------------------
# Kernel B: fused ASPP head (all conv branches + final 1x1 conv + BN + ReLU)
# ----------------------------------------------------------------------------
def _aspp_head_kernel(x_ref, w1_ref, wd_ref, wf_ref, bbr_ref, bf_ref, g_ref,
                      o_ref, *, dilations, H, W, pad, tile_rows):
    # x_ref : (1, HW + 2*pad, Cin) bf16  -- zero-padded flattened image (resident
    #                                       across the tile axis)
    # w1_ref: (Cin, C)      bf16         -- aspp1 1x1 conv, BN folded
    # wd_ref: (3, 9*Cin, C) bf16         -- aspp2-4 im2col weights, BN folded
    # wf_ref: (4, C, C)     bf16         -- final-conv slices for branches 1-4
    # bbr_ref: (4, 1, C)    f32          -- folded BN biases of branches 1-4
    # bf_ref: (1, C)        f32          -- folded BN bias of the final conv
    # g_ref : (1, 1, C)     f32          -- GAP-branch contribution (per image)
    # o_ref : (1, TM, C)    bf16
    Cin = x_ref.shape[-1]
    TM = tile_rows
    t = pl.program_id(1)
    base = pl.multiple_of(t * TM, TM)

    # ---- branch 1: 1x1 conv + BN + ReLU, then its slice of the fuse conv ----
    x_tile = x_ref[0, pl.ds(pad + base, TM), :]                     # (TM, Cin) bf16
    b1 = jnp.maximum(
        jnp.dot(x_tile, w1_ref[...], preferred_element_type=jnp.float32)
        + bbr_ref[0], 0.0)
    acc = jnp.dot(b1.astype(jnp.bfloat16), wf_ref[0],
                  preferred_element_type=jnp.float32)               # (TM, C) f32

    # global (y, x) coordinates of the output pixels of this tile
    row = base + lax.broadcasted_iota(jnp.int32, (TM, 1), 0)
    yy = row // W
    xx = row % W

    # ---- branches 2-4: dilated 3x3 conv as ONE im2col matmul per branch ----
    for bi, d in enumerate(dilations):
        cols = []
        for ky in range(3):
            for kx in range(3):
                dy = (ky - 1) * d
                dx = (kx - 1) * d
                if dy <= -H or dy >= H or dx <= -W or dx >= W:
                    # this tap reads only zero padding for every output pixel
                    cols.append(jnp.zeros((TM, Cin), jnp.bfloat16))
                    continue
                shift = dy * W + dx
                tap = x_ref[0, pl.ds(pad + base + shift, TM), :]    # (TM, Cin) bf16
                valid = ((yy + dy >= 0) & (yy + dy < H) &
                         (xx + dx >= 0) & (xx + dx < W))
                cols.append(jnp.where(valid, tap, jnp.zeros_like(tap)))
        im2col = jnp.concatenate(cols, axis=1)                      # (TM, 9*Cin) bf16
        br = jnp.maximum(
            jnp.dot(im2col, wd_ref[bi], preferred_element_type=jnp.float32)
            + bbr_ref[bi + 1], 0.0)
        acc = acc + jnp.dot(br.astype(jnp.bfloat16), wf_ref[bi + 1],
                            preferred_element_type=jnp.float32)

    # ---- GAP contribution + final-conv BN bias + ReLU (dropout = identity) ----
    y = acc + g_ref[0] + bf_ref[...]
    o_ref[0] = jnp.maximum(y, 0.0).astype(o_ref.dtype)


def aspp_head(x_pad, g_contrib, params, H, W, dil3):
    N, HWP, Cin = x_pad.shape
    HW = H * W
    pad = (HWP - HW) // 2
    Cout = params["w1"].shape[-1]

    w1 = params["w1"].astype(jnp.bfloat16)
    w_dil = jnp.stack(
        [params[f"w{i}"].reshape(9 * Cin, Cout) for i in (2, 3, 4)],
        axis=0).astype(jnp.bfloat16)                                # (3, 9*Cin, C)
    wf_br = params["w_fuse"][:4].astype(jnp.bfloat16)               # (4, C, C)
    b_br = jnp.stack([params[f"b{i}"] for i in (1, 2, 3, 4)],
                     axis=0).astype(jnp.float32)                    # (4, 1, C)
    b_fuse = params["b_fuse"].astype(jnp.float32)                   # (1, C)

    tm = _choose_tile(HW, 128)
    n_tiles = HW // tm
    kernel = functools.partial(_aspp_head_kernel, dilations=tuple(dil3),
                               H=H, W=W, pad=pad, tile_rows=tm)
    return pl.pallas_call(
        kernel,
        out_shape=jax.ShapeDtypeStruct((N, HW, Cout), jnp.bfloat16),
        grid=(N, n_tiles),
        in_specs=[
            pl.BlockSpec((1, HWP, Cin), lambda n, t: (n, 0, 0)),
            pl.BlockSpec((Cin, Cout), lambda n, t: (0, 0)),
            pl.BlockSpec((3, 9 * Cin, Cout), lambda n, t: (0, 0, 0)),
            pl.BlockSpec((4, Cout, Cout), lambda n, t: (0, 0, 0)),
            pl.BlockSpec((4, 1, Cout), lambda n, t: (0, 0, 0)),
            pl.BlockSpec((1, Cout), lambda n, t: (0, 0)),
            pl.BlockSpec((1, 1, Cout), lambda n, t: (n, 0, 0)),
        ],
        out_specs=pl.BlockSpec((1, tm, Cout), lambda n, t: (n, t, 0)),
        compiler_params=pltpu.CompilerParams(
            dimension_semantics=("parallel", "parallel"),
            vmem_limit_bytes=_VMEM_LIMIT),
    )(x_pad, w1, w_dil, wf_br, b_br, b_fuse, g_contrib)


# ----------------------------------------------------------------------------
# Parameters (synthetic, deterministic). BN scale folded into weight columns.
# ----------------------------------------------------------------------------
def _fold_bn_into_weight(w, gamma, beta, mean, var, eps=1e-5):
    scale = gamma / jnp.sqrt(var + eps)
    w_folded = (w * scale).astype(jnp.float32)             # scale output channels
    bias = (beta - mean * scale)[None, :].astype(jnp.float32)
    return w_folded, bias


def init_params(key, inplanes=256, branch_ch=256):
    keys = iter(jax.random.split(key, 32))

    def conv_w(k, shape):
        fan_in = shape[-2] if len(shape) == 2 else shape[0] * shape[-2]
        return jax.random.normal(k, shape, jnp.float32) / jnp.sqrt(jnp.float32(fan_in))

    def bn(k, c):
        k1, k2, k3, k4 = jax.random.split(k, 4)
        gamma = 1.0 + 0.1 * jax.random.normal(k1, (c,), jnp.float32)
        beta = 0.1 * jax.random.normal(k2, (c,), jnp.float32)
        mean = 0.1 * jax.random.normal(k3, (c,), jnp.float32)
        var = 0.5 + jnp.abs(jax.random.normal(k4, (c,), jnp.float32))
        return gamma, beta, mean, var

    p = {}
    w = conv_w(next(keys), (inplanes, branch_ch))                        # aspp1 1x1
    p["w1"], p["b1"] = _fold_bn_into_weight(w, *bn(next(keys), branch_ch))
    for i in (2, 3, 4):                                                  # aspp2-4 3x3
        w = conv_w(next(keys), (9, inplanes, branch_ch))
        p[f"w{i}"], p[f"b{i}"] = _fold_bn_into_weight(w, *bn(next(keys), branch_ch))
    w = conv_w(next(keys), (inplanes, branch_ch))                        # GAP 1x1
    p["w_gap"], p["b_gap"] = _fold_bn_into_weight(w, *bn(next(keys), branch_ch))
    w = conv_w(next(keys), (5, branch_ch, branch_ch))                    # fuse 1280->256
    p["w_fuse"], p["b_fuse"] = _fold_bn_into_weight(w, *bn(next(keys), branch_ch))
    return p


# ----------------------------------------------------------------------------
# ASPP forward (NCHW in / NCHW out)
# ----------------------------------------------------------------------------
def aspp_forward(x_nchw, params, dilations=(1, 6, 12, 18)):
    x = jnp.transpose(x_nchw, (0, 2, 3, 1)).astype(jnp.float32)          # NHWC
    N, H, W, Cin = x.shape
    HW = H * W
    xb = x.astype(jnp.bfloat16).reshape(N, HW, Cin)

    # GAP branch (mean + 1x1 conv + BN + ReLU) and its slice of the final conv.
    g = gap_fuse_contrib(xb, params["w_gap"], params["b_gap"],
                         params["w_fuse"][4])                             # (N, 256)
    g_contrib = g.reshape(N, 1, -1)

    # Zero-pad the flattened image so every dilated tap is a safe in-bounds
    # dynamic slice inside the kernel ("same" zero padding; row-wrap handled by
    # the in-kernel coordinate mask).
    dil3 = dilations[1:]
    max_shift = max(d * (W + 1) for d in dil3)
    pad = ((max_shift + 7) // 8) * 8
    x_pad = jnp.pad(xb, ((0, 0), (pad, pad), (0, 0)))

    out = aspp_head(x_pad, g_contrib, params, H, W, dil3)                # (N,HW,256) bf16
    out = out.astype(jnp.float32).reshape(N, H, W, -1)
    return jnp.transpose(out, (0, 3, 1, 2))                              # NCHW f32


# ----------------------------------------------------------------------------
# Pure-JAX float32 reference (same folded-BN inference semantics)
# ----------------------------------------------------------------------------
def reference_forward(x_nchw, params, dilations=(1, 6, 12, 18)):
    x = jnp.transpose(x_nchw, (0, 2, 3, 1)).astype(jnp.float32)
    N, H, W, Cin = x.shape
    relu = lambda v: jnp.maximum(v, 0.0)

    b1 = relu(jnp.einsum("nhwc,cf->nhwf", x, params["w1"]) + params["b1"])
    branches = [b1]
    for i, d in zip((2, 3, 4), dilations[1:]):
        w9 = params[f"w{i}"]
        xp = jnp.pad(x, ((0, 0), (d, d), (d, d), (0, 0)))
        acc = jnp.zeros((N, H, W, w9.shape[-1]), jnp.float32)
        for ky in range(3):
            for kx in range(3):
                patch = xp[:, ky * d:ky * d + H, kx * d:kx * d + W, :]
                acc = acc + jnp.einsum("nhwc,cf->nhwf", patch, w9[ky * 3 + kx])
        branches.append(relu(acc + params[f"b{i}"]))
    pooled = jnp.mean(x, axis=(1, 2))                                     # (N,Cin)
    g = relu(pooled @ params["w_gap"] + params["b_gap"])                  # (N,256)
    branches.append(jnp.broadcast_to(g[:, None, None, :], (N, H, W, g.shape[-1])))
    cat = jnp.concatenate(branches, axis=-1)                              # (N,H,W,1280)
    wf = params["w_fuse"].reshape(-1, params["w_fuse"].shape[-1])
    out = relu(jnp.einsum("nhwc,cf->nhwf", cat, wf) + params["b_fuse"])
    return jnp.transpose(out, (0, 3, 1, 2))


# ----------------------------------------------------------------------------
if __name__ == "__main__":
    inplanes = 256
    N, H, W = 2, 16, 16
    dilations = (1, 6, 12, 18)

    key = jax.random.PRNGKey(0)
    kx, kp = jax.random.split(key)
    x = jax.random.normal(kx, (N, inplanes, H, W), jnp.float32)
    params = init_params(kp, inplanes=inplanes)

    out = jax.block_until_ready(aspp_forward(x, params, dilations))
    assert out.shape == (N, 256, H, W), out.shape
    assert out.dtype == jnp.float32
    assert bool(jnp.all(jnp.isfinite(out)))

    ref = jax.block_until_ready(reference_forward(x, params, dilations))
    max_err = float(jnp.max(jnp.abs(out - ref)))
    tol = 0.05 * float(jnp.max(jnp.abs(ref))) + 0.05   # bf16-matmul / bf16-output tol
    assert max_err <= tol, f"max abs err {max_err} > tol {tol}"

    print("KERNEL_OK")
</pallas_src>

<mosaic_0001>
module attributes {stable_mosaic.version = 11 : i64} {
  func.func @_gap_contrib_kernel(%arg0: i32, %arg1: memref<2x256x256xbf16, #tpu.memory_space<vmem>>, %arg2: memref<256x256xbf16, #tpu.memory_space<vmem>>, %arg3: memref<1x256xf32, #tpu.memory_space<vmem>>, %arg4: memref<256x256xbf16, #tpu.memory_space<vmem>>, %arg5: memref<2x256xf32, #tpu.memory_space<vmem>>) attributes {dimension_semantics = [#tpu.dimension_semantics<arbitrary>], iteration_bounds = array<i64: 1>, scalar_prefetch = 0 : i64, scratch_operands = 0 : i64, tpu.core_type = #tpu.core_type<tc>, window_params = [{pipeline_mode = #tpu.pipeline_mode<synchronous>, transform_indices = @transform_0, window_bounds = array<i64: 2, 256, 256>}, {pipeline_mode = #tpu.pipeline_mode<synchronous>, transform_indices = @transform_1, window_bounds = array<i64: 256, 256>}, {pipeline_mode = #tpu.pipeline_mode<synchronous>, transform_indices = @transform_2, window_bounds = array<i64: 1, 256>}, {pipeline_mode = #tpu.pipeline_mode<synchronous>, transform_indices = @transform_3, window_bounds = array<i64: 256, 256>}, {pipeline_mode = #tpu.pipeline_mode<synchronous>, transform_indices = @transform_4, window_bounds = array<i64: 2, 256>}]} {
    %c0 = arith.constant 0 : index
    %c0_0 = arith.constant 0 : index
    %c0_1 = arith.constant 0 : index
    %0 = vector.load %arg1[%c0, %c0_0, %c0_1] : memref<2x256x256xbf16, #tpu.memory_space<vmem>>, vector<1x256x256xbf16>
    %1 = vector.shape_cast %0 : vector<1x256x256xbf16> to vector<256x256xbf16>
    %2 = arith.extf %1 : vector<256x256xbf16> to vector<256x256xf32>
    %cst = arith.constant dense<0.000000e+00> : vector<256xf32>
    %3 = vector.multi_reduction <add>, %2, %cst [0] : vector<256x256xf32> to vector<256xf32>
    %4 = vector.shape_cast %3 : vector<256xf32> to vector<1x256xf32>
    %cst_2 = arith.constant 2.560000e+02 : f32
    %5 = vector.broadcast %cst_2 : f32 to vector<1x256xf32>
    %6 = arith.divf %4, %5 : vector<1x256xf32>
    %c1 = arith.constant 1 : index
    %c0_3 = arith.constant 0 : index
    %c0_4 = arith.constant 0 : index
    %7 = vector.load %arg1[%c1, %c0_3, %c0_4] : memref<2x256x256xbf16, #tpu.memory_space<vmem>>, vector<1x256x256xbf16>
    %8 = vector.shape_cast %7 : vector<1x256x256xbf16> to vector<256x256xbf16>
    %9 = arith.extf %8 : vector<256x256xbf16> to vector<256x256xf32>
    %cst_5 = arith.constant dense<0.000000e+00> : vector<256xf32>
    %10 = vector.multi_reduction <add>, %9, %cst_5 [0] : vector<256x256xf32> to vector<256xf32>
    %11 = vector.shape_cast %10 : vector<256xf32> to vector<1x256xf32>
    %cst_6 = arith.constant 2.560000e+02 : f32
    %12 = vector.broadcast %cst_6 : f32 to vector<1x256xf32>
    %13 = arith.divf %11, %12 : vector<1x256xf32>
    %14 = tpu.concatenate %6, %13 in 0 : vector<1x256xf32>, vector<1x256xf32> -> vector<2x256xf32>
    %15 = arith.truncf %14 : vector<2x256xf32> to vector<2x256xbf16>
    %c0_7 = arith.constant 0 : index
    %c0_8 = arith.constant 0 : index
    %16 = vector.load %arg2[%c0_7, %c0_8] : memref<256x256xbf16, #tpu.memory_space<vmem>>, vector<256x256xbf16>
    %cst_9 = arith.constant dense<0.000000e+00> : vector<2x256xf32>
    %17 = tpu.matmul %15, %16, %cst_9 {dimension_numbers = #tpu.dot_dimension_numbers<[1], [0], [0], [1], [0, 0, 1, 1], [], []>} : vector<2x256xbf16>, vector<256x256xbf16>, vector<2x256xf32> -> vector<2x256xf32>
    %c0_10 = arith.constant 0 : index
    %c0_11 = arith.constant 0 : index
    %18 = vector.load %arg3[%c0_10, %c0_11] : memref<1x256xf32, #tpu.memory_space<vmem>>, vector<1x256xf32>
    %19 = vector.broadcast %18 : vector<1x256xf32> to vector<2x256xf32>
    %20 = arith.addf %17, %19 : vector<2x256xf32>
    %cst_12 = arith.constant 0.000000e+00 : f32
    %21 = vector.broadcast %cst_12 : f32 to vector<2x256xf32>
    %22 = arith.maximumf %20, %21 : vector<2x256xf32>
    %23 = arith.truncf %22 : vector<2x256xf32> to vector<2x256xbf16>
    %c0_13 = arith.constant 0 : index
    %c0_14 = arith.constant 0 : index
    %24 = vector.load %arg4[%c0_13, %c0_14] : memref<256x256xbf16, #tpu.memory_space<vmem>>, vector<256x256xbf16>
    %cst_15 = arith.constant dense<0.000000e+00> : vector<2x256xf32>
    %25 = tpu.matmul %23, %24, %cst_15 {dimension_numbers = #tpu.dot_dimension_numbers<[1], [0], [0], [1], [0, 0, 1, 1], [], []>} : vector<2x256xbf16>, vector<256x256xbf16>, vector<2x256xf32> -> vector<2x256xf32>
    %c0_16 = arith.constant 0 : index
    %c0_17 = arith.constant 0 : index
    %26 = vector.load %arg5[%c0_16, %c0_17] : memref<2x256xf32, #tpu.memory_space<vmem>>, vector<2x256xf32>
    tpu.vector_store %arg5[%c0_16, %c0_17], %25 {strides = array<i32>} : memref<2x256xf32, #tpu.memory_space<vmem>>, vector<2x256xf32>,
    return
  }
  func.func @transform_0(%arg0: i32) -> (i32, i32, i32) {
    %c0_i32 = arith.constant 0 : i32
    %c0_i32_0 = arith.constant 0 : i32
    %c0_i32_1 = arith.constant 0 : i32
    %c0_i32_2 = arith.constant 0 : i32
    return %c0_i32, %c0_i32_0, %c0_i32_1 : i32, i32, i32
  }
  func.func @transform_1(%arg0: i32) -> (i32, i32) {
    %c0_i32 = arith.constant 0 : i32
    %c0_i32_0 = arith.constant 0 : i32
    %c0_i32_1 = arith.constant 0 : i32
    return %c0_i32, %c0_i32_0 : i32, i32
  }
  func.func @transform_2(%arg0: i32) -> (i32, i32) {
    %c0_i32 = arith.constant 0 : i32
    %c0_i32_0 = arith.constant 0 : i32
    %c0_i32_1 = arith.constant 0 : i32
    return %c0_i32, %c0_i32_0 : i32, i32
  }
  func.func @transform_3(%arg0: i32) -> (i32, i32) {
    %c0_i32 = arith.constant 0 : i32
    %c0_i32_0 = arith.constant 0 : i32
    %c0_i32_1 = arith.constant 0 : i32
    return %c0_i32, %c0_i32_0 : i32, i32
  }
  func.func @transform_4(%arg0: i32) -> (i32, i32) {
    %c0_i32 = arith.constant 0 : i32
    %c0_i32_0 = arith.constant 0 : i32
    %c0_i32_1 = arith.constant 0 : i32
    return %c0_i32, %c0_i32_0 : i32, i32
  }
}

</mosaic_0001>

<bundles_post_ra>
// kernel: tpu_custom_call.1
= control target key start
LH: loop header
LB: loop body
LE: loop exit
PB: predicated region body
PF: predicated region fallthrough
CT: control target
= control target key end

     0   :  { %9 = vsyncpa [#allocation3], 0  ;;  %s1737_s0 = inlined_call_operand.hbm [shape: bf16[2,256,256], index: 0, kind: input, shape index: {}]   ;;  %s1738_s1 = inlined_call_operand.hbm [shape: bf16[256,256], index: 1, kind: input, shape index: {}]   ;;  %s1739_s2 = inlined_call_operand.hbm [shape: f32[1,256], index: 2, kind: input, shape index: {}]   ;;  %s1740_s3 = inlined_call_operand.hbm [shape: bf16[256,256], index: 3, kind: input, shape index: {}]   ;;  %s1741_s4 = inlined_call_operand.hbm [shape: f32[2,256], index: 4, kind: output, shape index: {}]  }
   0x1   :  { %10 = vsyncpa [#allocation6], 0 }
   0x2   :  { %11 = vsyncpa [#allocation9], 0 }
   0x3   :  { %12 = vsyncpa [#allocation4], 0  ;;  %s30_s17 = sshll.u32 %s1738_s1, 4  ;;  %s1418_s18 = smov [#allocation5]   ;;  %s31_s17 = int_to_ptr.hbm [resolvable:$true] %s30_s17 }
   0x4   :  { %s32_s19 = sshll.u32 %s1418_s18, 4  ;;  %s17_s22 = sshll.u32 %s1737_s0, 4  ;;  %s33_s19 = int_to_ptr.vmem [resolvable:$true] %s32_s19  ;;  %s18_s22 = int_to_ptr.hbm [resolvable:$true] %s17_s22 }
   0x5   :  { %s1419_s23 = smov 128   ;;  %s1420_s24 = smov 8  }
   0x6   :  { %38 = dma.hbm_to_vmem [thread:$0]  %s31_s17, 4096, %s33_s19, [#allocation6], %s1419_s23, %s1419_s23, %s1420_s24  }
   0x7   :  { %s1421_s25 = smov [#allocation2]   ;;  %s44_s29 = sshll.u32 %s1739_s2, 4  ;;  %s45_s29 = int_to_ptr.hbm [resolvable:$true] %s44_s29 }
   0x8   :  { %s19_s26 = sshll.u32 %s1421_s25, 4  ;;  %s54_s5 = sshll.u32 %s1740_s3, 4  ;;  %s20_s26 = int_to_ptr.vmem [resolvable:$true] %s19_s26  ;;  %s55_s5 = int_to_ptr.hbm [resolvable:$true] %s54_s5 }
   0x9   :  { %25 = dma.hbm_to_vmem [thread:$0]  %s18_s22, 8192, %s20_s26, [#allocation3], %s1419_s23, %s1419_s23, %s1420_s24  }
   0xa   :  { %s1422_s6 = smov [#allocation7]   ;;  %s1423_s0 = smov [#allocation8]  }
   0xb   :  { %s46_s7 = sshll.u32 %s1422_s6, 4  ;;  %s56_s8 = sshll.u32 %s1423_s0, 4  ;;  %s47_s7 = int_to_ptr.vmem [resolvable:$true] %s46_s7  ;;  %s57_s8 = int_to_ptr.vmem [resolvable:$true] %s56_s8 }
   0xc   :  { %49 = dma.hbm_to_vmem [thread:$0]  %s45_s29, 32, %s47_s7, [#allocation6]  }
   0xd   :  { %62 = dma.hbm_to_vmem [thread:$0]  %s55_s5, 4096, %s57_s8, [#allocation9], %s1419_s23, %s1419_s23, %s1420_s24  }
   0xe   :  { %1410 = dma.done.wait [#allocation3], 8192  }
   0xf   :  { %1411 = vsyncadd [#allocation3], 4294959104 }
  0x10   :  { %1412 = dma.done.wait [#allocation6], 4128  }
  0x11   :  { %1413 = vsyncadd [#allocation6], 4294963168 }
  0x12   :  { %1414 = dma.done.wait [#allocation9], 4096  }
  0x13   :  { %1415 = vsyncadd [#allocation9], 4294963200  ;;  %v1018_v0 = vld [vmem:[#allocation5 + $0x70] sm:$0xf]  ;;  %v1231_v1 = vld [vmem:[#allocation5 + $0x74] sm:$0xf0] }
  0x14   :  { %v1082_v2 = vld [vmem:[#allocation5 + $0xf0] sm:$0xf]  ;;  %v1019_v3 = vor.u32 %v1231_v1, %v1018_v0  ;;  %v1247_v4 = vld [vmem:[#allocation5 + $0xf4] sm:$0xf0]  ;;  %v1230_v5 = vld [vmem:[#allocation5 + $0x74] sm:$0xf] }
  0x15   :  { %v1020_v6 = vld [vmem:[#allocation5 + $0x78] sm:$0xf0]  ;;  %v1083_v7 = vor.u32 %v1247_v4, %v1082_v2  ;;  %v1246_v9 = vld [vmem:[#allocation5 + $0xf4] sm:$0xf]  ;;  %v1010_v11 = vld [vmem:[#allocation5 + $0x60] sm:$0xf] }
  0x16   :  { %v1023_v8 = vor.u32 %v1230_v5, %v1020_v6  ;;  %v1084_v10 = vld [vmem:[#allocation5 + $0xf8] sm:$0xf0]  ;;  %634 = vmatpush.bf16.msra.mxu0 %v1019_v3  ;;  %v1229_v13 = vld [vmem:[#allocation5 + $0x64] sm:$0xf0]  ;;  %v1074_v14 = vld [vmem:[#allocation5 + $0xe0] sm:$0xf] }
  0x17   :  { %v1087_v12 = vor.u32 %v1246_v9, %v1084_v10  ;;  %v1245_v15 = vld [vmem:[#allocation5 + $0xe4] sm:$0xf0]  ;;  %647 = vmatpush.bf16.msra.mxu1 %v1083_v7  ;;  %v1011_v16 = vor.u32 %v1229_v13, %v1010_v11  ;;  %v1228_v18 = vld [vmem:[#allocation5 + $0x64] sm:$0xf]  ;;  %v1012_v19 = vld [vmem:[#allocation5 + $0x68] sm:$0xf0] }
  0x18   :  { %660 = vmatpush.bf16.msra.mxu2 %v1023_v8  ;;  %v1075_v17 = vor.u32 %v1245_v15, %v1074_v14  ;;  %v1244_v20 = vld [vmem:[#allocation5 + $0xe4] sm:$0xf]  ;;  %v1015_v21 = vor.u32 %v1228_v18, %v1012_v19  ;;  %v1076_v22 = vld [vmem:[#allocation5 + $0xe8] sm:$0xf0]  ;;  %v1002_v23 = vld [vmem:[#allocation5 + $0x50] sm:$0xf] }
  0x19   :  { %673 = vmatpush.bf16.msra.mxu3 %v1087_v12  ;;  %v1227_v24 = vld [vmem:[#allocation5 + $0x54] sm:$0xf0]  ;;  %v1079_v25 = vor.u32 %v1244_v20, %v1076_v22  ;;  %v1066_v26 = vld [vmem:[#allocation5 + $0xd0] sm:$0xf]  ;;  %v1226_v28 = vld [vmem:[#allocation5 + $0x54] sm:$0xf] }
  0x1a   :  { %v1243_v27 = vld [vmem:[#allocation5 + $0xd4] sm:$0xf0]  ;;  %635 = vmatpush.bf16.msra.mxu0 %v1011_v16  ;;  %v1003_v29 = vor.u32 %v1227_v24, %v1002_v23  ;;  %v1004_v30 = vld [vmem:[#allocation5 + $0x58] sm:$0xf0]  ;;  %v1242_v31 = vld [vmem:[#allocation5 + $0xd4] sm:$0xf] }
  0x1b   :  { %v1068_v32 = vld [vmem:[#allocation5 + $0xd8] sm:$0xf0]  ;;  %648 = vmatpush.bf16.msra.mxu1 %v1075_v17  ;;  %v1067_v33 = vor.u32 %v1243_v27, %v1066_v26  ;;  %v1007_v34 = vor.u32 %v1226_v28, %v1004_v30  ;;  %v994_v35 = vld [vmem:[#allocation5 + $0x40] sm:$0xf]  ;;  %v1225_v36 = vld [vmem:[#allocation5 + $0x44] sm:$0xf0] }
  0x1c   :  { %661 = vmatpush.bf16.msra.mxu2 %v1015_v21  ;;  %v1058_v37 = vld [vmem:[#allocation5 + $0xc0] sm:$0xf]  ;;  %v1071_v38 = vor.u32 %v1242_v31, %v1068_v32  ;;  %v1241_v39 = vld [vmem:[#allocation5 + $0xc4] sm:$0xf0]  ;;  %v1224_v40 = vld [vmem:[#allocation5 + $0x44] sm:$0xf]  ;;  %v995_v44 = vor.u32 %v1225_v36, %v994_v35 }
  0x1d   :  { %674 = vmatpush.bf16.msra.mxu3 %v1079_v25  ;;  %v996_v41 = vld [vmem:[#allocation5 + $0x48] sm:$0xf0]  ;;  %v1240_v42 = vld [vmem:[#allocation5 + $0xc4] sm:$0xf]  ;;  %v1059_v45 = vor.u32 %v1241_v39, %v1058_v37  ;;  %v986_v47 = vld [vmem:[#allocation5 + $0x30] sm:$0xf] }
  0x1e   :  { %v1060_v43 = vld [vmem:[#allocation5 + $0xc8] sm:$0xf0]  ;;  %636 = vmatpush.bf16.msra.mxu0 %v1003_v29  ;;  %v999_v46 = vor.u32 %v1224_v40, %v996_v41  ;;  %v1223_v48 = vld [vmem:[#allocation5 + $0x34] sm:$0xf0]  ;;  %v1050_v49 = vld [vmem:[#allocation5 + $0xb0] sm:$0xf] }
  0x1f   :  { %649 = vmatpush.bf16.msra.mxu1 %v1067_v33  ;;  %v1063_v50 = vor.u32 %v1240_v42, %v1060_v43  ;;  %v1239_v51 = vld [vmem:[#allocation5 + $0xb4] sm:$0xf0]  ;;  %v1222_v52 = vld [vmem:[#allocation5 + $0x34] sm:$0xf]  ;;  %v988_v53 = vld [vmem:[#allocation5 + $0x38] sm:$0xf0]  ;;  %v987_v56 = vor.u32 %v1223_v48, %v986_v47 }
  0x20   :  { %662 = vmatpush.bf16.msra.mxu2 %v1007_v34  ;;  %v1238_v54 = vld [vmem:[#allocation5 + $0xb4] sm:$0xf]  ;;  %v1052_v55 = vld [vmem:[#allocation5 + $0xb8] sm:$0xf0]  ;;  %v1051_v57 = vor.u32 %v1239_v51, %v1050_v49  ;;  %v991_v58 = vor.u32 %v1222_v52, %v988_v53  ;;  %v978_v59 = vld [vmem:[#allocation5 + $0x20] sm:$0xf] }
  0x21   :  { %675 = vmatpush.bf16.msra.mxu3 %v1071_v38  ;;  %v1221_v60 = vld [vmem:[#allocation5 + $0x24] sm:$0xf0]  ;;  %v1042_v61 = vld [vmem:[#allocation5 + $0xa0] sm:$0xf]  ;;  %v1055_v62 = vor.u32 %v1238_v54, %v1052_v55  ;;  %v1220_v0 = vld [vmem:[#allocation5 + $0x24] sm:$0xf] }
  0x22   :  { %637 = vmatpush.bf16.msra.mxu0 %v995_v44  ;;  %v1237_v63 = vld [vmem:[#allocation5 + $0xa4] sm:$0xf0]  ;;  %v980_v1 = vld [vmem:[#allocation5 + $0x28] sm:$0xf0]  ;;  %v1236_v2 = vld [vmem:[#allocation5 + $0xa4] sm:$0xf]  ;;  %v979_v4 = vor.u32 %v1221_v60, %v978_v59 }
  0x23   :  { %650 = vmatpush.bf16.msra.mxu1 %v1059_v45  ;;  %v1044_v3 = vld [vmem:[#allocation5 + $0xa8] sm:$0xf0]  ;;  %v970_v5 = vld [vmem:[#allocation5 + $0x10] sm:$0xf]  ;;  %v1219_v6 = vld [vmem:[#allocation5 + $0x14] sm:$0xf0]  ;;  %v1043_v8 = vor.u32 %v1237_v63, %v1042_v61  ;;  %v983_v9 = vor.u32 %v1220_v0, %v980_v1 }
  0x24   :  { %663 = vmatpush.bf16.msra.mxu2 %v999_v46  ;;  %v1034_v7 = vld [vmem:[#allocation5 + $0x90] sm:$0xf]  ;;  %v1235_v10 = vld [vmem:[#allocation5 + $0x94] sm:$0xf0]  ;;  %v1218_v11 = vld [vmem:[#allocation5 + $0x14] sm:$0xf]  ;;  %v1047_v13 = vor.u32 %v1236_v2, %v1044_v3  ;;  %v971_v22 = vor.u32 %v1219_v6, %v970_v5 }
  0x25   :  { %676 = vmatpush.bf16.msra.mxu3 %v1063_v50  ;;  %v972_v12 = vld [vmem:[#allocation5 + $0x18] sm:$0xf0]  ;;  %v1234_v14 = vld [vmem:[#allocation5 + $0x94] sm:$0xf]  ;;  %v1463_v15 = vld [vmem:[#allocation2] sm:$0xff]  ;;  %v1035_v26 = vor.u32 %v1235_v10, %v1034_v7  ;;  %vm431_vm1 = vcmask 1040384  }
  0x26   :  { %638 = vmatpush.bf16.msra.mxu0 %v987_v56  ;;  %v1465_v16 = vld [vmem:[#allocation2 + $0x8] sm:$0xff]  ;;  %v1036_v17 = vld [vmem:[#allocation5 + $0x98] sm:$0xf0]  ;;  %v1467_v18 = vld [vmem:[#allocation2 + $0x10] sm:$0xff]  ;;  %v111_v20 = vunpack.c.l.bf16 %v1463_v15  ;;  %v975_v27 = vor.u32 %v1218_v11, %v972_v12  ;;  %s1425_s2 = smov [#allocation10]   ;;  %s948_s11 = sshll.u32 %s1741_s4, 4  ;;  %s949_s11 = int_to_ptr.hbm [resolvable:$true] %s948_s11 }
  0x27   :  { %651 = vmatpush.bf16.msra.mxu1 %v1051_v57  ;;  %v1469_v19 = vld [vmem:[#allocation2 + $0x18] sm:$0xff]  ;;  %v113_v21 = vunpack.c.l.bf16 %v1465_v16  ;;  %v962_v23 = vld [vmem:[#allocation5] sm:$0xf]  ;;  %v115_v25 = vunpack.c.l.bf16 %v1467_v18  ;;  %v1217_v28 = vld [vmem:[#allocation5 + $0x4] sm:$0xf0]  ;;  %v1039_v33 = vor.u32 %v1234_v14, %v1036_v17  ;;  %s946_s3 = sshll.u32 %s1425_s2, 4  ;;  %s947_s3 = int_to_ptr.vmem [resolvable:$true] %s946_s3 }
  0x28   :  { %664 = vmatpush.bf16.msra.mxu2 %v991_v58  ;;  %v1473_v24 = vld [vmem:[#allocation2 + $0x20] sm:$0xff]  ;;  %v1233_v30 = vld [vmem:[#allocation5 + $0x84] sm:$0xf0]  ;;  %v117_v31 = vunpack.c.l.bf16 %v1469_v19  ;;  %v964_v35 = vld [vmem:[#allocation5 + $0x8] sm:$0xf0]  ;;  %v963_v41 = vor.u32 %v1217_v28, %v962_v23  ;;  %vm937_vm2 = vcmask 1041408  }
  0x29   :  { %677 = vmatpush.bf16.msra.mxu3 %v1055_v62  ;;  %v1026_v29 = vld [vmem:[#allocation5 + $0x80] sm:$0xf]  ;;  %v175_v32 = vadd.f32 %v113_v21, %v111_v20  ;;  %v1216_v34 = vld [vmem:[#allocation5 + $0x4] sm:$0xf]  ;;  %v1477_v36 = vld [vmem:[#allocation2 + $0x28] sm:$0xff]  ;;  %v119_v39 = vunpack.c.l.bf16 %v1473_v24 }
  0x2a   :  { %639 = vmatpush.bf16.msra.mxu0 %v979_v4  ;;  %v1232_v37 = vld [vmem:[#allocation5 + $0x84] sm:$0xf]  ;;  %v1028_v38 = vld [vmem:[#allocation5 + $0x88] sm:$0xf0]  ;;  %v1480_v42 = vld [vmem:[#allocation2 + $0x30] sm:$0xff]  ;;  %v1027_v43 = vor.u32 %v1233_v30, %v1026_v29  ;;  %v967_v44 = vor.u32 %v1216_v34, %v964_v35  ;;  %v121_v45 = vunpack.c.l.bf16 %v1477_v36  ;;  %v112_v30 = vunpack.c.h.bf16 %v1463_v15 }
  0x2b   :  { %652 = vmatpush.bf16.msra.mxu1 %v1043_v8  ;;  %v176_v40 = vadd.f32 %v175_v32, %v115_v25  ;;  %v1031_v47 = vor.u32 %v1232_v37, %v1028_v38  ;;  %v1483_v48 = vld [vmem:[#allocation2 + $0x38] sm:$0xff]  ;;  %v123_v49 = vunpack.c.l.bf16 %v1480_v42  ;;  %v1486_v51 = vld [vmem:[#allocation2 + $0x40] sm:$0xff]  ;;  %v1491_v55 = vld [vmem:[#allocation2 + $0x108] sm:$0xff] }
  0x2c   :  { %665 = vmatpush.bf16.msra.mxu2 %v983_v9  ;;  %v125_v52 = vunpack.c.l.bf16 %v1483_v48  ;;  %v1489_v54 = vld [vmem:[#allocation2 + $0x100] sm:$0xff]  ;;  %v1493_v56 = vld [vmem:[#allocation2 + $0x110] sm:$0xff]  ;;  %v1495_v57 = vld [vmem:[#allocation2 + $0x48] sm:$0xff]  ;;  %v293_v60 = vunpack.c.l.bf16 %v1491_v55  ;;  %v127_v62 = vunpack.c.l.bf16 %v1486_v51 }
  0x2d   :  { %678 = vmatpush.bf16.msra.mxu3 %v1047_v13  ;;  %v177_v46 = vadd.f32 %v176_v40, %v117_v31  ;;  %v1497_v58 = vld [vmem:[#allocation2 + $0x118] sm:$0xff]  ;;  %v291_v59 = vunpack.c.l.bf16 %v1489_v54  ;;  %v295_v61 = vunpack.c.l.bf16 %v1493_v56  ;;  %v1503_v0 = vld [vmem:[#allocation2 + $0x120] sm:$0xff]  ;;  %v1505_v1 = vld [vmem:[#allocation2 + $0x50] sm:$0xff]  ;;  %v129_v4 = vunpack.c.l.bf16 %v1495_v57 }
  0x2e   :  { %640 = vmatpush.bf16.msra.mxu0 %v971_v22  ;;  %v297_v2 = vunpack.c.l.bf16 %v1497_v58  ;;  %v1509_v6 = vld [vmem:[#allocation2 + $0x128] sm:$0xff]  ;;  %v1511_v7 = vld [vmem:[#allocation2 + $0x58] sm:$0xff]  ;;  %v299_v8 = vunpack.c.l.bf16 %v1503_v0  ;;  %v131_v10 = vunpack.c.l.bf16 %v1505_v1  ;;  %v1515_v12 = vld [vmem:[#allocation2 + $0x130] sm:$0xff]  ;;  %v114_v31 = vunpack.c.h.bf16 %v1465_v16 }
  0x2f   :  { %653 = vmatpush.bf16.msra.mxu1 %v1035_v26  ;;  %v178_v50 = vadd.f32 %v177_v46, %v119_v39  ;;  %v355_v3 = vadd.f32 %v293_v60, %v291_v59  ;;  %v1517_v13 = vld [vmem:[#allocation2 + $0x60] sm:$0xff]  ;;  %v301_v14 = vunpack.c.l.bf16 %v1509_v6  ;;  %v133_v20 = vunpack.c.l.bf16 %v1511_v7  ;;  %v1521_v22 = vld [vmem:[#allocation2 + $0x138] sm:$0xff]  ;;  %v1523_v23 = vld [vmem:[#allocation2 + $0x68] sm:$0xff] }
  0x30   :  { %666 = vmatpush.bf16.msra.mxu2 %v975_v27  ;;  %v303_v25 = vunpack.c.l.bf16 %v1515_v12  ;;  %v135_v27 = vunpack.c.l.bf16 %v1517_v13  ;;  %v1527_v29 = vld [vmem:[#allocation2 + $0x140] sm:$0xff]  ;;  %v1531_v32 = vld [vmem:[#allocation2 + $0x70] sm:$0xff]  ;;  %v137_v35 = vunpack.c.l.bf16 %v1523_v23  ;;  %v1535_v38 = vld [vmem:[#allocation2 + $0x148] sm:$0xff]  ;;  %v116_v39 = vunpack.c.h.bf16 %v1467_v18 }
  0x31   :  { %679 = vmatpush.bf16.msra.mxu3 %v1039_v33  ;;  %v179_v53 = vadd.f32 %v178_v50, %v121_v45  ;;  %v356_v9 = vadd.f32 %v355_v3, %v295_v61  ;;  %v305_v33 = vunpack.c.l.bf16 %v1521_v22  ;;  %v1538_v40 = vld [vmem:[#allocation2 + $0x78] sm:$0xff]  ;;  %v139_v15 = vunpack.c.l.bf16 %v1531_v32  ;;  %v1552_v61 = vld [vmem:[#allocation2 + $0x88] sm:$0xff]  ;;  %v1556_v3 = vld [vmem:[#allocation2 + $0x160] sm:$0xff] }
  0x32   :  { %641 = vmatpush.bf16.msra.mxu0 %v963_v41  ;;  %v307_v41 = vunpack.c.l.bf16 %v1527_v29  ;;  %v118_v45 = vunpack.c.h.bf16 %v1469_v19  ;;  %v212_v46 = vadd.f32 %v114_v31, %v112_v30  ;;  %v141_v18 = vunpack.c.l.bf16 %v1538_v40 }
  0x33   :  { %654 = vmatpush.bf16.msra.mxu1 %v1027_v43  ;;  %v180_v63 = vadd.f32 %v179_v53, %v123_v49  ;;  %v357_v17 = vadd.f32 %v356_v9, %v297_v2  ;;  %v309_v49 = vunpack.c.l.bf16 %v1535_v38  ;;  %v1549_v53 = vld [vmem:[#allocation2 + $0x158] sm:$0xff]  ;;  %v120_v59 = vunpack.c.h.bf16 %v1473_v24 }
  0x34   :  { %667 = vmatpush.bf16.msra.mxu2 %v967_v44  ;;  %v1542_v44 = vld [vmem:[#allocation2 + $0x150] sm:$0xff]  ;;  %v213_v60 = vadd.f32 %v212_v46, %v116_v39  ;;  %v313_v9 = vunpack.c.l.bf16 %v1549_v53  ;;  %v145_v24 = vunpack.c.l.bf16 %v1552_v61  ;;  %v126_v30 = vunpack.c.h.bf16 %v1483_v48  ;;  %v1577_v39 = vld [vmem:[#allocation2 + $0x178] sm:$0xff] }
  0x35   :  { %680 = vmatpush.bf16.msra.mxu3 %v1031_v47  ;;  %v181_v5 = vadd.f32 %v180_v63, %v125_v52  ;;  %v358_v26 = vadd.f32 %v357_v17, %v299_v8  ;;  %v1545_v47 = vld [vmem:[#allocation2 + $0x80] sm:$0xff]  ;;  %v1559_v8 = vld [vmem:[#allocation2 + $0x90] sm:$0xff]  ;;  %v124_v17 = vunpack.c.h.bf16 %v1480_v42 }
  0x36   :  { %v143_v19 = vunpack.c.l.bf16 %v1545_v47  ;;  %v1583_v48 = vld [vmem:[#allocation2 + $0xb0] sm:$0xff] }
  0x37   :  { %v182_v11 = vadd.f32 %v181_v5, %v127_v62  ;;  %v359_v34 = vadd.f32 %v358_v26, %v301_v14  ;;  %v311_v62 = vunpack.c.l.bf16 %v1542_v44  ;;  %v214_v5 = vadd.f32 %v213_v60, %v118_v45  ;;  %v1563_v14 = vld [vmem:[#allocation2 + $0x168] sm:$0xff] }
  0x39   :  { %v183_v21 = vadd.f32 %v182_v11, %v129_v4  ;;  %v360_v43 = vadd.f32 %v359_v34, %v303_v25  ;;  %v122_v4 = vunpack.c.h.bf16 %v1477_v36  ;;  %v315_v25 = vunpack.c.l.bf16 %v1556_v3 }
  0x3a   :  { %v147_v36 = vunpack.c.l.bf16 %v1559_v8  ;;  %v317_v34 = vunpack.c.l.bf16 %v1563_v14 }
  0x3b   :  { %v184_v28 = vadd.f32 %v183_v21, %v131_v10  ;;  %v361_v50 = vadd.f32 %v360_v43, %v305_v33  ;;  %v1566_v21 = vld [vmem:[#allocation2 + $0x98] sm:$0xff]  ;;  %v1573_v33 = vld [vmem:[#allocation2 + $0xa0] sm:$0xff] }
  0x3c   :  { %v149_v42 = vunpack.c.l.bf16 %v1566_v21  ;;  %v151_v46 = vunpack.c.l.bf16 %v1573_v33 }
  0x3d   :  { %v185_v37 = vadd.f32 %v184_v28, %v133_v20  ;;  %v362_v63 = vadd.f32 %v361_v50, %v307_v41  ;;  %v215_v20 = vadd.f32 %v214_v5, %v120_v59  ;;  %v1570_v28 = vld [vmem:[#allocation2 + $0x170] sm:$0xff]  ;;  %v128_v41 = vunpack.c.h.bf16 %v1486_v51  ;;  %v1586_v50 = vld [vmem:[#allocation2 + $0x180] sm:$0xff]  ;;  %v1589_v59 = vld [vmem:[#allocation2 + $0xb8] sm:$0xff] }
  0x3e   :  { %v321_v51 = vunpack.c.l.bf16 %v1577_v39  ;;  %v1596_v5 = vld [vmem:[#allocation2 + $0xc0] sm:$0xff] }
  0x3f   :  { %v186_v16 = vadd.f32 %v185_v37, %v135_v27  ;;  %v363_v10 = vadd.f32 %v362_v63, %v309_v49  ;;  %v216_v31 = vadd.f32 %v215_v20, %v122_v4  ;;  %v1603_v20 = vld [vmem:[#allocation2 + $0x190] sm:$0xff] }
  0x41   :  { %v187_v52 = vadd.f32 %v186_v16, %v137_v35  ;;  %v364_v26 = vadd.f32 %v363_v10, %v311_v62  ;;  %v217_v43 = vadd.f32 %v216_v31, %v124_v17  ;;  %v319_v16 = vunpack.c.l.bf16 %v1570_v28 }
  0x42   :  { %v294_v31 = vunpack.c.h.bf16 %v1491_v55 }
  0x43   :  { %v188_v2 = vadd.f32 %v187_v52, %v139_v15  ;;  %v365_v35 = vadd.f32 %v364_v26, %v313_v9  ;;  %v1580_v15 = vld [vmem:[#allocation2 + $0xa8] sm:$0xff]  ;;  %v218_v52 = vadd.f32 %v217_v43, %v126_v30  ;;  %v155_v9 = vunpack.c.l.bf16 %v1583_v48  ;;  %v1615_v43 = vld [vmem:[#allocation2 + $0xd8] sm:$0xff] }
  0x44   :  { %v153_v62 = vunpack.c.l.bf16 %v1580_v15  ;;  %v292_v30 = vunpack.c.h.bf16 %v1489_v54 }
  0x45   :  { %v189_v11 = vadd.f32 %v188_v2, %v141_v18  ;;  %v366_v45 = vadd.f32 %v365_v35, %v315_v25  ;;  %v130_v18 = vunpack.c.h.bf16 %v1495_v57  ;;  %v132_v2 = vunpack.c.h.bf16 %v1505_v1 }
  0x46   :  { %v219_v4 = vadd.f32 %v218_v52, %v128_v41  ;;  %v323_v57 = vunpack.c.l.bf16 %v1586_v50  ;;  %v134_v25 = vunpack.c.h.bf16 %v1511_v7 }
  0x47   :  { %v190_v27 = vadd.f32 %v189_v11, %v143_v19  ;;  %v367_v60 = vadd.f32 %v366_v45, %v317_v34  ;;  %v1593_v19 = vld [vmem:[#allocation2 + $0x188] sm:$0xff]  ;;  %v157_v11 = vunpack.c.l.bf16 %v1589_v59  ;;  %v159_v34 = vunpack.c.l.bf16 %v1596_v5 }
  0x48   :  { %v220_v26 = vadd.f32 %v219_v4, %v130_v18  ;;  %v325_v1 = vunpack.c.l.bf16 %v1593_v19  ;;  %v138_v18 = vunpack.c.h.bf16 %v1523_v23 }
  0x49   :  { %v191_v37 = vadd.f32 %v190_v27, %v145_v24  ;;  %v368_v10 = vadd.f32 %v367_v60, %v319_v16  ;;  %v1600_v24 = vld [vmem:[#allocation2 + $0xc8] sm:$0xff]  ;;  %v327_v16 = vunpack.c.l.bf16 %v1603_v20 }
  0x4a   :  { %v221_v41 = vadd.f32 %v220_v26, %v132_v2  ;;  %v161_v7 = vunpack.c.l.bf16 %v1600_v24  ;;  %v165_v2 = vunpack.c.l.bf16 %v1615_v43 }
  0x4b   :  { %v192_v49 = vadd.f32 %v191_v37, %v147_v36  ;;  %v1606_v36 = vld [vmem:[#allocation2 + $0xd0] sm:$0xff]  ;;  %v369_v27 = vadd.f32 %v368_v10, %v321_v51  ;;  %v136_v37 = vunpack.c.h.bf16 %v1517_v13  ;;  %v1624_v51 = vld [vmem:[#allocation2 + $0xe0] sm:$0xff]  ;;  %v1632_v10 = vld [vmem:[#allocation2 + $0xe8] sm:$0xff] }
  0x4c   :  { %v163_v54 = vunpack.c.l.bf16 %v1606_v36  ;;  %v222_v52 = vadd.f32 %v221_v41, %v134_v25  ;;  %v300_v25 = vunpack.c.h.bf16 %v1503_v0 }
  0x4d   :  { %v193_v63 = vadd.f32 %v192_v49, %v149_v42  ;;  %v1612_v42 = vld [vmem:[#allocation2 + $0x198] sm:$0xff]  ;;  %v370_v45 = vadd.f32 %v369_v27, %v323_v57  ;;  %v1621_v49 = vld [vmem:[#allocation2 + $0x1a0] sm:$0xff]  ;;  %v1637_v27 = vld [vmem:[#allocation2 + $0x1b0] sm:$0xff] }
  0x4e   :  { %v329_v13 = vunpack.c.l.bf16 %v1612_v42  ;;  %v223_v57 = vadd.f32 %v222_v52, %v136_v37  ;;  %v331_v23 = vunpack.c.l.bf16 %v1621_v49  ;;  %v302_v37 = vunpack.c.h.bf16 %v1509_v6 }
  0x4f   :  { %v194_v17 = vadd.f32 %v193_v63, %v151_v46  ;;  %v296_v46 = vunpack.c.h.bf16 %v1493_v56  ;;  %v371_v60 = vadd.f32 %v370_v45, %v325_v1  ;;  %v392_v63 = vadd.f32 %v294_v31, %v292_v30  ;;  %v1629_v56 = vld [vmem:[#allocation2 + $0x1a8] sm:$0xff]  ;;  %v1640_v31 = vld [vmem:[#allocation2 + $0xf0] sm:$0xff]  ;;  %v1645_v45 = vld [vmem:[#allocation2 + $0x1b8] sm:$0xff] }
  0x50   :  { %v167_v1 = vunpack.c.l.bf16 %v1624_v51  ;;  %v224_v30 = vadd.f32 %v223_v57, %v138_v18  ;;  %v304_v18 = vunpack.c.h.bf16 %v1515_v12  ;;  %v146_v6 = vunpack.c.h.bf16 %v1552_v61 }
  0x51   :  { %v195_v35 = vadd.f32 %v194_v17, %v153_v62  ;;  %v298_v62 = vunpack.c.h.bf16 %v1497_v58  ;;  %v372_v17 = vadd.f32 %v371_v60, %v327_v16  ;;  %v393_v26 = vadd.f32 %v392_v63, %v296_v46  ;;  %v1651_v63 = vld [vmem:[#allocation2 + $0x1c0] sm:$0xff] }
  0x52   :  { %v169_v16 = vunpack.c.l.bf16 %v1632_v10  ;;  %v171_v60 = vunpack.c.l.bf16 %v1640_v31  ;;  %v148_v12 = vunpack.c.h.bf16 %v1559_v8  ;;  %v308_v61 = vunpack.c.h.bf16 %v1527_v29 }
  0x53   :  { %v196_v55 = vadd.f32 %v195_v35, %v155_v9  ;;  %v140_v9 = vunpack.c.h.bf16 %v1531_v32  ;;  %v333_v32 = vunpack.c.l.bf16 %v1629_v56  ;;  %v373_v35 = vadd.f32 %v372_v17, %v329_v13 }
  0x54   :  { %v394_v41 = vadd.f32 %v393_v26, %v298_v62  ;;  %v152_v29 = vunpack.c.h.bf16 %v1573_v33 }
  0x55   :  { %v197_v4 = vadd.f32 %v196_v55, %v157_v11  ;;  %v142_v11 = vunpack.c.h.bf16 %v1538_v40  ;;  %v225_v46 = vadd.f32 %v224_v30, %v140_v9  ;;  %v335_v55 = vunpack.c.l.bf16 %v1637_v27  ;;  %v1663_v30 = vld [vmem:[#allocation2 + $0x1d0] sm:$0xff] }
  0x56   :  { %v374_v40 = vadd.f32 %v373_v35, %v331_v23  ;;  %v395_v52 = vadd.f32 %v394_v41, %v300_v25  ;;  %v306_v9 = vunpack.c.h.bf16 %v1521_v22  ;;  %v1659_v25 = vld [vmem:[#allocation2 + $0xf8] sm:$0xff]  ;;  %v150_v22 = vunpack.c.h.bf16 %v1566_v21 }
  0x57   :  { %v198_v58 = vadd.f32 %v197_v4, %v159_v34  ;;  %v144_v34 = vunpack.c.h.bf16 %v1545_v47  ;;  %v226_v62 = vadd.f32 %v225_v46, %v142_v11  ;;  %v337_v4 = vunpack.c.l.bf16 %v1645_v45  ;;  %v1669_v46 = vld [vmem:[#allocation2 + $0x1d8] sm:$0xff] }
  0x58   :  { %v375_v47 = vadd.f32 %v374_v40, %v333_v32  ;;  %v396_v57 = vadd.f32 %v395_v52, %v302_v37  ;;  %v310_v37 = vunpack.c.h.bf16 %v1535_v38  ;;  %v312_v21 = vunpack.c.h.bf16 %v1542_v44 }
  0x59   :  { %v199_v0 = vadd.f32 %v198_v58, %v161_v7  ;;  %v1654_v7 = vld [vmem:[#allocation2 + $0x1c8] sm:$0xff]  ;;  %v227_v17 = vadd.f32 %v226_v62, %v144_v34  ;;  %v154_v38 = vunpack.c.h.bf16 %v1580_v15  ;;  %v345_v62 = vunpack.c.l.bf16 %v1669_v46 }
  0x5a   :  { %v376_v26 = vadd.f32 %v375_v47, %v335_v55  ;;  %v397_v58 = vadd.f32 %v396_v57, %v304_v18  ;;  %v341_v32 = vunpack.c.l.bf16 %v1654_v7  ;;  %v343_v55 = vunpack.c.l.bf16 %v1663_v30 }
  0x5b   :  { %v200_v13 = vadd.f32 %v199_v0, %v163_v54  ;;  %v339_v54 = vunpack.c.l.bf16 %v1651_v63  ;;  %v228_v35 = vadd.f32 %v227_v17, %v146_v6  ;;  %v173_v0 = vunpack.c.l.bf16 %v1659_v25 }
  0x5c   :  { %v377_v8 = vadd.f32 %v376_v26, %v337_v4  ;;  %v398_v41 = vadd.f32 %v397_v58, %v306_v9  ;;  %v314_v4 = vunpack.c.h.bf16 %v1549_v53  ;;  %v1679_v9 = vld [vmem:[#allocation2 + $0x1e8] sm:$0xff]  ;;  %v156_v57 = vunpack.c.h.bf16 %v1583_v48  ;;  %v1686_v26 = vld [vmem:[#allocation2 + $0x1f0] sm:$0xff] }
  0x5d   :  { %v201_v23 = vadd.f32 %v200_v13, %v165_v2  ;;  %v1424_v2 = vmov 256.0   ;;  %v1674_v13 = vld [vmem:[#allocation2 + $0x1e0] sm:$0xff]  ;;  %v316_v15 = vunpack.c.h.bf16 %v1556_v3  ;;  %v158_v53 = vunpack.c.h.bf16 %v1589_v59 }
  0x5e   :  { %1288 = vrcp.f32 %v1424_v2  ;;  %v378_v40 = vadd.f32 %v377_v8, %v339_v54  ;;  %v399_v18 = vadd.f32 %v398_v41, %v308_v61  ;;  %v349_v58 = vunpack.c.l.bf16 %v1679_v9  ;;  %v1692_v2 = vld [vmem:[#allocation2 + $0x1f8] sm:$0xff] }
  0x5f   :  { %v202_v11 = vadd.f32 %v201_v23, %v167_v1  ;;  %v229_v1 = vadd.f32 %v228_v35, %v148_v12  ;;  %v318_v48 = vunpack.c.h.bf16 %v1563_v14  ;;  %v160_v3 = vunpack.c.h.bf16 %v1596_v5 }
  0x60   :  { %v400_v47 = vadd.f32 %v399_v18, %v310_v37  ;;  %v351_v37 = vunpack.c.l.bf16 %v1686_v26  ;;  %v320_v59 = vunpack.c.h.bf16 %v1570_v28  ;;  %v322_v14 = vunpack.c.h.bf16 %v1577_v39 }
  0x61   :  { %v203_v34 = vadd.f32 %v202_v11, %v169_v16  ;;  %v230_v6 = vadd.f32 %v229_v1, %v150_v22  ;;  %v379_v16 = vadd.f32 %v378_v40, %v341_v32  ;;  %v164_v5 = vunpack.c.h.bf16 %v1606_v36 }
  0x62   :  { %v401_v17 = vadd.f32 %v400_v47, %v312_v21  ;;  %v166_v28 = vunpack.c.h.bf16 %v1615_v43  ;;  %v326_v39 = vunpack.c.h.bf16 %v1593_v19  ;;  %v328_v36 = vunpack.c.h.bf16 %v1603_v20 }
  0x63   :  { %v204_v52 = vadd.f32 %v203_v34, %v171_v60  ;;  %v231_v23 = vadd.f32 %v230_v6, %v152_v29  ;;  %v347_v60 = vunpack.c.l.bf16 %v1674_v13  ;;  %v380_v12 = vadd.f32 %v379_v16, %v343_v55 }
  0x64   :  { %v1682_v44 = vpop.eup %1288  ;;  %v402_v32 = vadd.f32 %v401_v17, %v314_v4  ;;  %v162_v34 = vunpack.c.h.bf16 %v1600_v24  ;;  %v353_v55 = vunpack.c.l.bf16 %v1692_v2  ;;  %v324_v6 = vunpack.c.h.bf16 %v1586_v50 }
  0x65   :  { %v205_v33 = vadd.f32 %v204_v52, %v173_v0  ;;  %v232_v61 = vadd.f32 %v231_v23, %v154_v38  ;;  %v381_v11 = vadd.f32 %v380_v12, %v345_v62  ;;  %v250_v35 = vmul.f32 256.0, %v1682_v44 }
  0x66   :  { %v403_v0 = vadd.f32 %v402_v32, %v316_v15  ;;  %v170_v50 = vunpack.c.h.bf16 %v1632_v10  ;;  %vm254_vm0 = vweird.f32 %v1682_v44 }
  0x67   :  { %v206_v54 = vrot.slane %v205_v33, 4  ;;  %v233_v8 = vadd.f32 %v232_v61, %v156_v57  ;;  %v382_v41 = vadd.f32 %v381_v11, %v347_v60  ;;  %v251_v18 = vsub.f32 1.0, %v250_v35 }
  0x68   :  { %v404_v21 = vadd.f32 %v403_v0, %v318_v48  ;;  %v168_v57 = vunpack.c.h.bf16 %v1624_v51  ;;  %v172_v61 = vunpack.c.h.bf16 %v1640_v31  ;;  %v332_v11 = vunpack.c.h.bf16 %v1621_v49 }
  0x69   :  { %v207_v22 = vadd.f32 %v206_v54, %v205_v33  ;;  %v234_v29 = vadd.f32 %v233_v8, %v158_v53  ;;  %v383_v40 = vadd.f32 %v382_v41, %v349_v58  ;;  %v252_v33 = vmul.f32 %v1682_v44, %v251_v18 }
  0x6a   :  { %v405_v62 = vadd.f32 %v404_v21, %v320_v59  ;;  %v330_v54 = vunpack.c.h.bf16 %v1612_v42  ;;  %v338_v0 = vunpack.c.h.bf16 %v1645_v45  ;;  %v344_v21 = vunpack.c.h.bf16 %v1663_v30  ;;  %v1146_v45 = vld [vmem:[#allocation8 + $0x70] sm:$0xf] }
  0x6b   :  { %v208_v1 = vrot.slane %v207_v22, 2  ;;  %v235_v52 = vadd.f32 %v234_v29, %v160_v3  ;;  %v384_v38 = vadd.f32 %v383_v40, %v351_v37  ;;  %v253_v19 = vadd.f32 %v1682_v44, %v252_v33 }
  0x6c   :  { %v406_v47 = vadd.f32 %v405_v62, %v322_v14  ;;  %v174_v3 = vunpack.c.h.bf16 %v1659_v25  ;;  %v336_v37 = vunpack.c.h.bf16 %v1637_v27  ;;  %v1148_v62 = vld [vmem:[#allocation8 + $0x78] sm:$0xf0] }
  0x6d   :  { %v236_v16 = vadd.f32 %v235_v52, %v162_v34  ;;  %v209_v24 = vadd.f32 %v208_v1, %v207_v22  ;;  %v385_v4 = vadd.f32 %v384_v38, %v353_v55  ;;  %v334_v22 = vunpack.c.h.bf16 %v1629_v56  ;;  %v1262_v52 = vld [vmem:[#allocation8 + $0x74] sm:$0xf] }
  0x6e   :  { %v407_v12 = vadd.f32 %v406_v47, %v324_v6  ;;  %v1715_v42 = vsel %vm254_vm0, %v1682_v44, %v253_v19  ;;  %v340_v44 = vunpack.c.h.bf16 %v1651_v63  ;;  %v342_v1 = vunpack.c.h.bf16 %v1654_v7  ;;  %v1260_v7 = vld [vmem:[#allocation8 + $0x64] sm:$0xf]  ;;  %v1132_v19 = vld [vmem:[#allocation8 + $0x58] sm:$0xf0] }
  0x6f   :  { %v237_v23 = vadd.f32 %v236_v16, %v164_v5  ;;  %v386_v60 = vrot.slane %v385_v4, 4  ;;  %v210_v17 = vrot.slane %v209_v24, 1  ;;  %v1263_v5 = vld [vmem:[#allocation8 + $0x74] sm:$0xf0]  ;;  %v346_v38 = vunpack.c.h.bf16 %v1669_v46  ;;  %v1261_v16 = vld [vmem:[#allocation8 + $0x64] sm:$0xf0] }
  0x70   :  { %v408_v53 = vadd.f32 %v407_v12, %v326_v39  ;;  %v1147_v63 = vor.u32 %v1263_v5, %v1146_v45  ;;  %v348_v47 = vunpack.c.h.bf16 %v1674_v13  ;;  %v1212_v12 = vld [vmem:[#allocation8 + $0xf8] sm:$0xf0]  ;;  %v352_v13 = vunpack.c.h.bf16 %v1686_v26  ;;  %v1254_v45 = vld [vmem:[#allocation8 + $0x34] sm:$0xf] }
  0x71   :  { %v238_v15 = vadd.f32 %v237_v23, %v166_v28  ;;  %v387_v43 = vadd.f32 %v386_v60, %v385_v4  ;;  %v211_v32 = vadd.f32 %v210_v17, %v209_v24  ;;  %v1138_v28 = vld [vmem:[#allocation8 + $0x60] sm:$0xf]  ;;  %v1151_v24 = vor.u32 %v1262_v52, %v1148_v62  ;;  %v1140_v4 = vld [vmem:[#allocation8 + $0x68] sm:$0xf0]  ;;  %v1279_v23 = vld [vmem:[#allocation8 + $0xf4] sm:$0xf0] }
  0x72   :  { %v409_v20 = vadd.f32 %v408_v53, %v328_v36  ;;  %882 = vmatpush.bf16.msrb.mxu0 %v1147_v63  ;;  %v1139_v33 = vor.u32 %v1261_v16, %v1138_v28  ;;  %v1278_v60 = vld [vmem:[#allocation8 + $0xf4] sm:$0xf]  ;;  %v1143_v36 = vor.u32 %v1260_v7, %v1140_v4  ;;  %v350_v17 = vunpack.c.h.bf16 %v1679_v9  ;;  %v1257_v9 = vld [vmem:[#allocation8 + $0x44] sm:$0xf0]  ;;  %v1116_v5 = vld [vmem:[#allocation8 + $0x38] sm:$0xf0] }
  0x73   :  { %v239_v58 = vadd.f32 %v238_v15, %v168_v57  ;;  %v388_v51 = vrot.slane %v387_v43, 2  ;;  %v256_v59 = vmul.f32 %v1715_v42, %v211_v32  ;;  %v1210_v57 = vld [vmem:[#allocation8 + $0xf0] sm:$0xf]  ;;  %908 = vmatpush.bf16.msrb.mxu2 %v1151_v24  ;;  %v1259_v15 = vld [vmem:[#allocation8 + $0x54] sm:$0xf0]  ;;  %v354_v26 = vunpack.c.h.bf16 %v1692_v2 }
  0x74   :  { %v410_v35 = vadd.f32 %v409_v20, %v330_v54  ;;  %v1211_v46 = vor.u32 %v1279_v23, %v1210_v57  ;;  %v1215_v54 = vor.u32 %v1278_v60, %v1212_v12  ;;  %v1258_v53 = vld [vmem:[#allocation8 + $0x54] sm:$0xf]  ;;  %v1204_v20 = vld [vmem:[#allocation8 + $0xe8] sm:$0xf0]  ;;  %v1119_v62 = vor.u32 %v1254_v45, %v1116_v5  ;;  %v1106_v28 = vld [vmem:[#allocation8 + $0x20] sm:$0xf] }
  0x75   :  { %v240_v48 = vadd.f32 %v239_v58, %v170_v50  ;;  %v389_v10 = vadd.f32 %v388_v51, %v387_v43  ;;  %v1130_v50 = vld [vmem:[#allocation8 + $0x50] sm:$0xf]  ;;  %v1277_v51 = vld [vmem:[#allocation8 + $0xe4] sm:$0xf0]  ;;  %v1252_v4 = vld [vmem:[#allocation8 + $0x24] sm:$0xf] }
  0x76   :  { %v411_v41 = vadd.f32 %v410_v35, %v332_v11  ;;  %895 = vmatpush.bf16.msrb.mxu1 %v1211_v46  ;;  %v1131_v58 = vor.u32 %v1259_v15, %v1130_v50  ;;  %v1276_v11 = vld [vmem:[#allocation8 + $0xe4] sm:$0xf]  ;;  %883 = vmatpush.bf16.msrb.mxu0 %v1139_v33  ;;  %v1122_v35 = vld [vmem:[#allocation8 + $0x40] sm:$0xf]  ;;  %v1253_v16 = vld [vmem:[#allocation8 + $0x24] sm:$0xf0] }
  0x77   :  { %v390_v8 = vrot.slane %v389_v10, 1  ;;  %v241_v31 = vadd.f32 %v240_v48, %v172_v61  ;;  %v1202_v61 = vld [vmem:[#allocation8 + $0xe0] sm:$0xf]  ;;  %921 = vmatpush.bf16.msrb.mxu3 %v1215_v54  ;;  %909 = vmatpush.bf16.msrb.mxu2 %v1143_v36  ;;  %v1270_v54 = vld [vmem:[#allocation8 + $0xb4] sm:$0xf] }
  0x78   :  { %v412_v34 = vadd.f32 %v411_v41, %v334_v22  ;;  %v1207_v22 = vor.u32 %v1276_v11, %v1204_v20  ;;  %v468_v45 = vld [vmem:[#allocation7] sm:$0x3] }
  0x79   :  { %v391_v49 = vadd.f32 %v390_v8, %v389_v10  ;;  %v242_v29 = vadd.f32 %v241_v31, %v174_v3  ;;  %v1203_v10 = vor.u32 %v1277_v51, %v1202_v61  ;;  %v1135_v3 = vor.u32 %v1258_v53, %v1132_v19  ;;  %v1256_v8 = vld [vmem:[#allocation8 + $0x44] sm:$0xf]  ;;  %v1194_v31 = vld [vmem:[#allocation8 + $0xd0] sm:$0xf]  ;;  %v1180_v19 = vld [vmem:[#allocation8 + $0xb8] sm:$0xf0] }
  0x7a   :  { %v413_v14 = vadd.f32 %v412_v34, %v336_v37  ;;  %v1275_v37 = vld [vmem:[#allocation8 + $0xd4] sm:$0xf0]  ;;  %884 = vmatpush.bf16.msrb.mxu0 %v1131_v58  ;;  %v1183_v61 = vor.u32 %v1270_v54, %v1180_v19  ;;  %v1250_v51 = vld [vmem:[#allocation8 + $0x14] sm:$0xf]  ;;  %v470_v5 = vperm.slane %v468_v45, 0 }
  0x7b   :  { %v429_v56 = vmul.f32 %v391_v49, %v1715_v42  ;;  %v243_v40 = vrot.slane %v242_v29, 4  ;;  %v1274_v49 = vld [vmem:[#allocation8 + $0xd4] sm:$0xf]  ;;  %896 = vmatpush.bf16.msrb.mxu1 %v1203_v10  ;;  %v1195_v34 = vor.u32 %v1275_v37, %v1194_v31  ;;  %922 = vmatpush.bf16.msrb.mxu3 %v1207_v22  ;;  %v1251_v58 = vld [vmem:[#allocation8 + $0x14] sm:$0xf0] }
  0x7c   :  { %v414_v55 = vadd.f32 %v413_v14, %v338_v0  ;;  %v1196_v0 = vld [vmem:[#allocation8 + $0xd8] sm:$0xf0]  ;;  %v1114_v14 = vld [vmem:[#allocation8 + $0x30] sm:$0xf]  ;;  %910 = vmatpush.bf16.msrb.mxu2 %v1135_v3  ;;  %v1269_v10 = vld [vmem:[#allocation8 + $0xa4] sm:$0xf0] }
  0x7d   :  { %v432_v25 = vsel %vm431_vm1, %v256_v59, %v429_v56  ;;  %v244_v39 = vadd.f32 %v243_v40, %v242_v29  ;;  %v1124_v59 = vld [vmem:[#allocation8 + $0x48] sm:$0xf0]  ;;  %v1123_v29 = vor.u32 %v1257_v9, %v1122_v35  ;;  %v1272_v40 = vld [vmem:[#allocation8 + $0xc4] sm:$0xf]  ;;  %v1249_v31 = vld [vmem:[#allocation8 + $0x4] sm:$0xf0] }
  0x7e   :  { %v434_v27 = vpack.c.bf16 %v432_v25, %v432_v25  ;;  %v415_v18 = vadd.f32 %v414_v55, %v340_v44  ;;  %v1199_v44 = vor.u32 %v1274_v49, %v1196_v0  ;;  %v1186_v25 = vld [vmem:[#allocation8 + $0xc0] sm:$0xf]  ;;  %v1127_v55 = vor.u32 %v1256_v8, %v1124_v59  ;;  %v1268_v22 = vld [vmem:[#allocation8 + $0xa4] sm:$0xf]  ;;  %v1172_v9 = vld [vmem:[#allocation8 + $0xa8] sm:$0xf0] }
  0x7f   :  { %v245_v48 = vrot.slane %v244_v39, 2  ;;  %897 = vmatpush.bf16.msrb.mxu1 %v1195_v34  ;;  %885 = vmatpush.bf16.msrb.mxu0 %v1123_v29  ;;  %v1175_v3 = vor.u32 %v1268_v22, %v1172_v9  ;;  %v1090_v8 = vld [vmem:[#allocation8] sm:$0xf]  ;;  %v1248_v37 = vld [vmem:[#allocation8 + $0x4] sm:$0xf] }
  0x80   :  { %642 = vmatmul.bf16.vlgmr.msra.gmra.mxu0 %v434_v27  ;;  %668 = vmatmul.bf16.vlgmr.msra.gmra.mxu2 %v434_v27  ;;  %v416_v6 = vadd.f32 %v415_v18, %v342_v1  ;;  %v1273_v1 = vld [vmem:[#allocation8 + $0xc4] sm:$0xf0]  ;;  %v1255_v27 = vld [vmem:[#allocation8 + $0x34] sm:$0xf0]  ;;  %v1162_v49 = vld [vmem:[#allocation8 + $0x90] sm:$0xf] }
  0x81   :  { %v246_v2 = vadd.f32 %v245_v48, %v244_v39  ;;  %v1187_v52 = vor.u32 %v1273_v1, %v1186_v25  ;;  %923 = vmatpush.bf16.msrb.mxu3 %v1199_v44  ;;  %911 = vmatpush.bf16.msrb.mxu2 %v1127_v55  ;;  %v1100_v48 = vld [vmem:[#allocation8 + $0x18] sm:$0xf0]  ;;  %v1267_v0 = vld [vmem:[#allocation8 + $0x94] sm:$0xf0]  ;;  %v1266_v29 = vld [vmem:[#allocation8 + $0x94] sm:$0xf] }
  0x82   :  { %v417_v30 = vadd.f32 %v416_v6, %v344_v21  ;;  %v1188_v21 = vld [vmem:[#allocation8 + $0xc8] sm:$0xf0]  ;;  %v1115_v6 = vor.u32 %v1255_v27, %v1114_v14  ;;  %v1164_v44 = vld [vmem:[#allocation8 + $0x98] sm:$0xf0]  ;;  %v1154_v1 = vld [vmem:[#allocation8 + $0x80] sm:$0xf] }
  0x83   :  { %v1191_v63 = vor.u32 %v1272_v40, %v1188_v21  ;;  %v247_v24 = vrot.slane %v246_v2, 1  ;;  %898 = vmatpush.bf16.msrb.mxu1 %v1187_v52  ;;  %v1167_v14 = vor.u32 %v1266_v29, %v1164_v44  ;;  %v1265_v55 = vld [vmem:[#allocation8 + $0x84] sm:$0xf0]  ;;  %v1264_v27 = vld [vmem:[#allocation8 + $0x84] sm:$0xf] }
  0x84   :  { %v418_v43 = vadd.f32 %v417_v30, %v346_v38  ;;  %886 = vmatpush.bf16.msrb.mxu0 %v1115_v6  ;;  %v1107_v30 = vor.u32 %v1253_v16, %v1106_v28  ;;  %v1155_v40 = vor.u32 %v1265_v55, %v1154_v1  ;;  %v1156_v21 = vld [vmem:[#allocation8 + $0x88] sm:$0xf0] }
  0x85   :  { %924 = vmatpush.bf16.msrb.mxu3 %v1191_v63  ;;  %912 = vmatpush.bf16.msrb.mxu2 %v1119_v62  ;;  %v248_v57 = vadd.f32 %v247_v24, %v246_v2  ;;  %v1159_v2 = vor.u32 %v1264_v27, %v1156_v21 }
  0x86   :  { %v419_v32 = vadd.f32 %v418_v43, %v348_v47  ;;  %v1108_v47 = vld [vmem:[#allocation8 + $0x28] sm:$0xf0]  ;;  %v1271_v43 = vld [vmem:[#allocation8 + $0xb4] sm:$0xf0] }
  0x87   :  { %v1111_v33 = vor.u32 %v1252_v4, %v1108_v47  ;;  %v257_v36 = vmul.f32 %v1715_v42, %v248_v57 }
  0x88   :  { %v420_v41 = vadd.f32 %v419_v32, %v350_v17  ;;  %887 = vmatpush.bf16.msrb.mxu0 %v1107_v30  ;;  %v1178_v17 = vld [vmem:[#allocation8 + $0xb0] sm:$0xf]  ;;  %v1170_v32 = vld [vmem:[#allocation8 + $0xa0] sm:$0xf] }
  0x89   :  { %913 = vmatpush.bf16.msrb.mxu2 %v1111_v33  ;;  %v1179_v53 = vor.u32 %v1271_v43, %v1178_v17  ;;  %925 = vmatpush.bf16.msrb.mxu3 %v1183_v61  ;;  %v1171_v35 = vor.u32 %v1269_v10, %v1170_v32 }
  0x8a   :  { %v421_v56 = vadd.f32 %v420_v41, %v352_v13  ;;  %v1098_v13 = vld [vmem:[#allocation8 + $0x10] sm:$0xf]  ;;  %v1092_v41 = vld [vmem:[#allocation8 + $0x8] sm:$0xf0] }
  0x8b   :  { %899 = vmatpush.bf16.msrb.mxu1 %v1179_v53  ;;  %v1099_v20 = vor.u32 %v1251_v58, %v1098_v13  ;;  %v1095_v59 = vor.u32 %v1248_v37, %v1092_v41 }
  0x8c   :  { %v422_v18 = vadd.f32 %v421_v56, %v354_v26  ;;  %v1091_v26 = vor.u32 %v1249_v31, %v1090_v8  ;;  %v1163_v56 = vor.u32 %v1267_v0, %v1162_v49 }
  0x8d   :  { %888 = vmatpush.bf16.msrb.mxu0 %v1099_v20  ;;  %926 = vmatpush.bf16.msrb.mxu3 %v1175_v3 }
  0x8e   :  { %v423_v38 = vrot.slane %v422_v18, 4 }
  0x8f   :  { %900 = vmatpush.bf16.msrb.mxu1 %v1171_v35 }
  0x90   :  { %v424_v7 = vadd.f32 %v423_v38, %v422_v18  ;;  %v471_v38 = vperm.slane %v468_v45, 1 }
  0x91   :  { %889 = vmatpush.bf16.msrb.mxu0 %v1091_v26  ;;  %927 = vmatpush.bf16.msrb.mxu3 %v1167_v14 }
  0x92   :  { %v425_v39 = vrot.slane %v424_v7, 2 }
  0x93   :  { %901 = vmatpush.bf16.msrb.mxu1 %v1163_v56 }
  0x94   :  { %v426_v23 = vadd.f32 %v425_v39, %v424_v7 }
  0x95   :  { %928 = vmatpush.bf16.msrb.mxu3 %v1159_v2 }
  0x96   :  { %v427_v60 = vrot.slane %v426_v23, 1 }
  0x97   :  { %902 = vmatpush.bf16.msrb.mxu1 %v1155_v40 }
  0x98   :  { %v428_v46 = vadd.f32 %v427_v60, %v426_v23 }
  0x9a   :  { %v430_v12 = vmul.f32 %v428_v46, %v1715_v42  ;;  %v1103_v42 = vor.u32 %v1250_v51, %v1100_v48 }
  0x9c   :  { %v433_v50 = vsel %vm431_vm1, %v257_v36, %v430_v12  ;;  %914 = vmatpush.bf16.msrb.mxu2 %v1103_v42 }
  0x9d   :  { %v435_v15 = vpack.c.bf16 %v433_v50, %v433_v50 }
  0x9f   :  { %655 = vmatmul.bf16.vlgmr.msra.gmra.mxu1 %v435_v15  ;;  %681 = vmatmul.bf16.vlgmr.msra.gmra.mxu3 %v435_v15 }
  0xa0   :  { %915 = vmatpush.bf16.msrb.mxu2 %v1095_v59 }
  0xfd   :  { %v643_v11 = vpop.f32.mrf.mxu0 }
  0xfe   :  { %v644_v52 = vadd.f32 %v643_v11, %v470_v5 }
 0x103   :  { %v669_v34 = vpop.f32.mrf.mxu2 }
 0x104   :  { %v670_v28 = vadd.f32 %v669_v34, %v471_v38 }
 0x105   :  { %v645_v25 = vpop.f32.mrf.mxu0 }
 0x10b   :  { %v671_v18 = vpop.f32.mrf.mxu2 }
 0x11c   :  { %v656_v6 = vpop.f32.mrf.mxu1 }
 0x11d   :  { %v657_v63 = vadd.f32 %v656_v6, %v644_v52 }
 0x11f   :  { %v686_v62 = vmax.f32 %v657_v63, 0.0 }
 0x121   :  { %v688_v16 = vpack.c.bf16 %v686_v62, %v686_v62 }
 0x122   :  { %v682_v24 = vpop.f32.mrf.mxu3 }
 0x123   :  { %v683_v7 = vadd.f32 %v682_v24, %v670_v28  ;;  %890 = vmatmul.bf16.vlgmr.msrb.gmra.mxu0 %v688_v16  ;;  %916 = vmatmul.bf16.vlgmr.msrb.gmra.mxu2 %v688_v16 }
 0x124   :  { %v658_v4 = vpop.f32.mrf.mxu1 }
 0x125   :  { %v687_v47 = vmax.f32 %v683_v7, 0.0 }
 0x127   :  { %v689_v39 = vpack.c.bf16 %v687_v47, %v687_v47 }
 0x129   :  { %903 = vmatmul.bf16.vlgmr.msrb.gmra.mxu1 %v689_v39  ;;  %929 = vmatmul.bf16.vlgmr.msrb.gmra.mxu3 %v689_v39 }
 0x12a   :  { %v684_v30 = vpop.f32.mrf.mxu3 }
 0x1a0   :  { %v891_v33 = vpop.f32.mrf.mxu0 }
 0x1a6   :  { %v904_v57 = vpop.f32.mrf.mxu1  ;;  %v917_v23 = vpop.f32.mrf.mxu2 }
 0x1a7   :  { %v905_v15 = vadd.f32 %v904_v57, %v891_v33 }
 0x1a8   :  { %v893_v60 = vpop.f32.mrf.mxu0 }
 0x1ac   :  { %v930_v36 = vpop.f32.mrf.mxu3 }
 0x1ad   :  { %v931_v46 = vadd.f32 %v930_v36, %v917_v23 }
 0x1ae   :  { %v906_v12 = vpop.f32.mrf.mxu1  ;;  %v919_v50 = vpop.f32.mrf.mxu2 }
 0x1af   :  { %v936_v17 = vrot.slane %v931_v46, 6 }
 0x1b1   :  { %v938_v43 = vsel %vm937_vm2, %v905_v15, %v936_v17 }
 0x1b2   :  { %940 = vst [vmem:[#allocation10] sm:$0xf] %v938_v43 }
 0x1b3   :  { %951 = dma.vmem_to_hbm [thread:$0]  %s947_s3, 64, %s949_s11, [#allocation4]  }
 0x1b4   :  { %v932_v54 = vpop.f32.mrf.mxu3 }
 0x1b5   :  { %1416 = dma.done.wait [#allocation4], 64  }
 0x1b6   :  { %1417 = vsyncadd [#allocation4], 4294967232 }
 0x1b7   :  { %956 = vsyncpa [#allocation3], 1 }
 0x1b8   :  { %957 = vsyncpa [#allocation6], 1 }
 0x1b9   :  { %958 = vsyncpa [#allocation9], 1 }
 0x1ba   :  { %959 = vsyncpa [#allocation4], 1 }

</bundles_post_ra>
